<compile_context>
chip_gen: v7x
topology: tpu7x:2x2x1
jax: 0.10.0
libtpu: 0.0.40
codegen_flags: <defaults>
</compile_context>

<pallas_src>
import functools

import jax
import jax.numpy as jnp
from jax import lax
from jax.experimental import pallas as pl
from jax.experimental.pallas import tpu as pltpu


def _ceil_to(x, m):
    return ((x + m - 1) // m) * m


# ----------------------------------------------------------------------------
# Fused kernel: [place x2 | upsample+pad x1] -> conv1+BN+ReLU -> conv2+BN+ReLU
# ----------------------------------------------------------------------------
def _up_doubleconv_kernel(x2_ref, x1_ref, m1_ref, w1_ref, b1_ref, w2_ref,
                          b2_ref, o_ref, cat_ref, mid_ref,
                          *, H, W, C1, C2, CATP, MIDP, Cout):
    # x2_ref : (1, C2, H*W)          f32   high-res skip, flattened spatial
    # x1_ref : (1, C1, H1*W1)        f32   low-res input, flattened spatial
    # m1_ref : (H1*W1, L)            f32   upsample+pad placement matrix
    # w1_ref : (MIDP, 9*CATP)        bf16  conv1 weights (BN scale folded)
    # b1_ref : (MIDP, 1)             f32   conv1 shift (bias + BN)
    # w2_ref : (Cout, 9*MIDP)        bf16  conv2 weights (BN scale folded)
    # b2_ref : (Cout, 1)             f32   conv2 shift
    # o_ref  : (1, Cout, H*W)        f32   lane-dense output
    # cat_ref: (CATP, L)             f32   scratch: padded concat(conv1 input)
    # mid_ref: (MIDP, L)             f32   scratch: padded conv1 output
    HW = H * W
    OFF = W + 1  # interior offset in the flat (vertically padded + guard) layout

    # Column-position masks that emulate the conv's horizontal zero padding in
    # the flattened layout (left/right taps wrap across rows otherwise).
    col = lax.broadcasted_iota(jnp.int32, (1, HW), 1) % W
    not_left = col != 0
    not_right = col != (W - 1)

    def im2col(src_ref):
        # Build the (9*C, HW) patch matrix: one contiguous lane slice per tap.
        pieces = []
        for dy in range(3):
            for dx in range(3):
                s = dy * W + dx
                p = src_ref[:, s:s + HW]
                if dx == 0:
                    p = jnp.where(not_left, p, 0.0)
                elif dx == 2:
                    p = jnp.where(not_right, p, 0.0)
                pieces.append(p)
        return jnp.concatenate(pieces, axis=0).astype(jnp.bfloat16)

    # ---- build the concatenated, spatially padded conv1 input in VMEM ------
    cat_ref[...] = jnp.zeros_like(cat_ref)
    # x2 channels: interior only (vertical conv padding / guards stay zero).
    cat_ref[0:C2, OFF:OFF + HW] = x2_ref[0]
    # x1 channels: bilinear upsample + F.pad + conv padding, all folded into M1.
    cat_ref[C2:C2 + C1, :] = jnp.dot(
        x1_ref[0], m1_ref[...], preferred_element_type=jnp.float32)

    # ---- conv1 + BN + ReLU: single MXU matmul, lane-dense (MIDP, HW) -------
    y1 = jnp.maximum(
        jnp.dot(w1_ref[...], im2col(cat_ref),
                preferred_element_type=jnp.float32) + b1_ref[...], 0.0)

    # ---- conv2 + BN + ReLU: intermediate never leaves VMEM -----------------
    mid_ref[...] = jnp.zeros_like(mid_ref)
    mid_ref[:, OFF:OFF + HW] = y1
    y2 = jnp.maximum(
        jnp.dot(w2_ref[...], im2col(mid_ref),
                preferred_element_type=jnp.float32) + b2_ref[...], 0.0)

    o_ref[0] = y2.astype(o_ref.dtype)


# ----------------------------------------------------------------------------
# Host-side helpers
# ----------------------------------------------------------------------------
def _interp_matrix(n_in, n_out):
    """Row-interpolation matrix for bilinear upsample with align_corners=True."""
    if n_out == 1:
        return jnp.zeros((1, n_in), jnp.float32).at[0, 0].set(1.0)
    src = jnp.arange(n_out, dtype=jnp.float32) * (n_in - 1) / (n_out - 1)
    i0 = jnp.clip(jnp.floor(src).astype(jnp.int32), 0, n_in - 1)
    i1 = jnp.minimum(i0 + 1, n_in - 1)
    frac = src - i0.astype(jnp.float32)
    return (jax.nn.one_hot(i0, n_in) * (1.0 - frac)[:, None]
            + jax.nn.one_hot(i1, n_in) * frac[:, None])        # (n_out, n_in)


def _build_up_pad_matrix(H1, W1, Ho, Wo, Hout, Wout, pad_top, pad_left):
    """Matrix M1 (H1*W1, L) with L=(Hout+2)*Wout+2 so that x1_flat @ M1 is the
    flattened, vertically-conv-padded conv1 input coming from the x1 branch
    (bilinear 2x align_corners upsample followed by F.pad)."""
    Uy = _interp_matrix(H1, Ho)                                  # (Ho, H1)
    Ux = _interp_matrix(W1, Wo)                                  # (Wo, W1)
    row_mat = jnp.zeros((Hout + 2, H1), jnp.float32)
    row_mat = row_mat.at[1 + pad_top:1 + pad_top + Ho, :].set(Uy)
    col_mat = jnp.zeros((Wout, W1), jnp.float32)
    col_mat = col_mat.at[pad_left:pad_left + Wo, :].set(Ux)
    # M_core[a*W1+b, r*Wout+c] = row_mat[r, a] * col_mat[c, b]
    m_core = jnp.einsum('ra,cb->abrc', row_mat, col_mat)
    m_core = m_core.reshape(H1 * W1, (Hout + 2) * Wout)
    return jnp.pad(m_core, ((0, 0), (1, 1)))                     # guard lanes


def _fold_conv_bn(p, cin_pad, cout_pad, eps):
    """Fold eval-mode BN into the conv weights; return (Cout_pad, 9*Cin_pad)
    bf16 weight matrix (transposed, im2col row order) and f32 shift column."""
    scale = p["gamma"] / jnp.sqrt(p["var"] + eps)                # (Cout,)
    shift = (p["b"] - p["mean"]) * scale + p["beta"]             # (Cout,)
    w = p["w"] * scale[None, None, None, :]                      # (3,3,Cin,Cout)
    cin, cout = w.shape[2], w.shape[3]
    w = jnp.pad(w, ((0, 0), (0, 0), (0, cin_pad - cin), (0, cout_pad - cout)))
    w_mat = w.reshape(9 * cin_pad, cout_pad).T                   # (Coutp, 9*Cinp)
    shift = jnp.pad(shift, (0, cout_pad - cout)).reshape(cout_pad, 1)
    return w_mat.astype(jnp.bfloat16), shift.astype(jnp.float32)


# ----------------------------------------------------------------------------
# Up.forward (fully fused Pallas path)
# ----------------------------------------------------------------------------
def up_forward(x1_nchw, x2_nchw, params, *, eps=1e-5):
    N, C1, H1, W1 = x1_nchw.shape
    N2, C2, H, W = x2_nchw.shape
    assert N == N2
    Ho, Wo = 2 * H1, 2 * W1
    diffY, diffX = H - Ho, W - Wo
    assert diffY >= 0 and diffX >= 0
    pad_top, pad_left = diffY // 2, diffX // 2

    HW = H * W
    L = (H + 2) * W + 2
    Cin1 = C2 + C1
    p1, p2 = params["conv1"], params["conv2"]
    Cmid = p1["w"].shape[-1]
    Cout = p2["w"].shape[-1]
    CATP = _ceil_to(Cin1, 8)          # sublane-aligned concat buffer rows
    MIDP = _ceil_to(Cmid, 8)          # sublane-aligned intermediate rows

    w1_mat, b1_vec = _fold_conv_bn(p1, CATP, MIDP, eps)
    w2_mat, b2_vec = _fold_conv_bn(p2, MIDP, Cout, eps)
    m1 = _build_up_pad_matrix(H1, W1, Ho, Wo, H, W, pad_top, pad_left)

    x1_flat = x1_nchw.reshape(N, C1, H1 * W1).astype(jnp.float32)
    x2_flat = x2_nchw.reshape(N, C2, HW).astype(jnp.float32)

    kernel = functools.partial(
        _up_doubleconv_kernel,
        H=H, W=W, C1=C1, C2=C2, CATP=CATP, MIDP=MIDP, Cout=Cout)

    out_flat = pl.pallas_call(
        kernel,
        out_shape=jax.ShapeDtypeStruct((N, Cout, HW), jnp.float32),
        grid_spec=pltpu.PrefetchScalarGridSpec(
            num_scalar_prefetch=0,
            grid=(N,),
            in_specs=[
                pl.BlockSpec((1, C2, HW), lambda n: (n, 0, 0)),
                pl.BlockSpec((1, C1, H1 * W1), lambda n: (n, 0, 0)),
                pl.BlockSpec((H1 * W1, L), lambda n: (0, 0)),
                pl.BlockSpec((MIDP, 9 * CATP), lambda n: (0, 0)),
                pl.BlockSpec((MIDP, 1), lambda n: (0, 0)),
                pl.BlockSpec((Cout, 9 * MIDP), lambda n: (0, 0)),
                pl.BlockSpec((Cout, 1), lambda n: (0, 0)),
            ],
            out_specs=pl.BlockSpec((1, Cout, HW), lambda n: (n, 0, 0)),
            scratch_shapes=[
                pltpu.VMEM((CATP, L), jnp.float32),   # padded concat input
                pltpu.VMEM((MIDP, L), jnp.float32),   # padded conv1 output
            ],
        ),
        compiler_params=pltpu.CompilerParams(
            dimension_semantics=("parallel",)),
    )(x2_flat, x1_flat, m1, w1_mat, b1_vec, w2_mat, b2_vec)

    # (N, Cout, H*W) -> (N, Cout, H, W): NCHW, same as PyTorch.
    return out_flat.reshape(N, Cout, H, W)


# ----------------------------------------------------------------------------
# Pure-JAX (f32) reference for a self-contained correctness check
# ----------------------------------------------------------------------------
def _ref_bilinear_up2_align_corners(x):   # NCHW
    N, C, H, W = x.shape
    Ho, Wo = 2 * H, 2 * W

    def coords(n_in, n_out):
        src = jnp.arange(n_out, dtype=jnp.float32) * (n_in - 1) / (n_out - 1)
        i0 = jnp.clip(jnp.floor(src).astype(jnp.int32), 0, n_in - 1)
        i1 = jnp.minimum(i0 + 1, n_in - 1)
        return i0, i1, src - i0.astype(jnp.float32)

    y0, y1, wy = coords(H, Ho)
    x0, x1, wx = coords(W, Wo)
    top = jnp.take(x, y0, axis=2)
    bot = jnp.take(x, y1, axis=2)
    a = jnp.take(top, x0, axis=3)
    b = jnp.take(top, x1, axis=3)
    c = jnp.take(bot, x0, axis=3)
    d = jnp.take(bot, x1, axis=3)
    wy_ = wy[None, None, :, None]
    wx_ = wx[None, None, None, :]
    return (a * (1 - wy_) * (1 - wx_) + b * (1 - wy_) * wx_ +
            c * wy_ * (1 - wx_) + d * wy_ * wx_)


def _ref_conv_bn_relu(x, p, eps=1e-5):    # NCHW, HWIO weights
    y = lax.conv_general_dilated(x, p["w"], (1, 1), ((1, 1), (1, 1)),
                                 dimension_numbers=("NCHW", "HWIO", "NCHW"))
    y = y + p["b"][None, :, None, None]
    scale = p["gamma"] / jnp.sqrt(p["var"] + eps)
    y = ((y - p["mean"][None, :, None, None]) * scale[None, :, None, None]
         + p["beta"][None, :, None, None])
    return jnp.maximum(y, 0.0)


def up_forward_ref(x1, x2, params):
    x1u = _ref_bilinear_up2_align_corners(x1)
    diffY = x2.shape[2] - x1u.shape[2]
    diffX = x2.shape[3] - x1u.shape[3]
    x1u = jnp.pad(x1u, ((0, 0), (0, 0),
                        (diffY // 2, diffY - diffY // 2),
                        (diffX // 2, diffX - diffX // 2)))
    x = jnp.concatenate([x2, x1u], axis=1)
    y = _ref_conv_bn_relu(x, params["conv1"])
    y = _ref_conv_bn_relu(y, params["conv2"])
    return y


# ----------------------------------------------------------------------------
# Parameter construction (deterministic, synthetic, non-trivial BN stats)
# ----------------------------------------------------------------------------
def make_conv_bn_params(key, cin, cout):
    k1, k2, k3, k4, k5, k6 = jax.random.split(key, 6)
    return dict(
        w=jax.random.normal(k1, (3, 3, cin, cout), jnp.float32) * 0.1,  # HWIO
        b=jax.random.normal(k2, (cout,), jnp.float32) * 0.1,
        gamma=1.0 + 0.1 * jax.random.normal(k3, (cout,), jnp.float32),
        beta=0.1 * jax.random.normal(k4, (cout,), jnp.float32),
        mean=0.1 * jax.random.normal(k5, (cout,), jnp.float32),
        var=jax.random.uniform(k6, (cout,), jnp.float32, 0.5, 1.5),
    )


# ----------------------------------------------------------------------------
if __name__ == "__main__":
    key = jax.random.PRNGKey(0)
    k_x1, k_x2, k_p1, k_p2 = jax.random.split(key, 4)

    # Up(in_channels=8, out_channels=4, bilinear=True)
    # x1: low-res (4 ch, 8x8), x2: high-res skip (4 ch, 16x16); NCHW.
    in_channels = 8
    out_channels = 4
    x1 = jax.random.normal(k_x1, (2, in_channels // 2, 8, 8), jnp.float32)
    x2 = jax.random.normal(k_x2, (2, in_channels // 2, 16, 16), jnp.float32)

    params = {
        "conv1": make_conv_bn_params(k_p1, in_channels, out_channels),
        "conv2": make_conv_bn_params(k_p2, out_channels, out_channels),
    }

    out = jax.block_until_ready(jax.jit(up_forward)(x1, x2, params))
    ref = jax.block_until_ready(up_forward_ref(x1, x2, params))

    assert out.shape == (2, out_channels, 16, 16), out.shape
    # Tolerance loosened vs pure-f32 because the MXU matmul operands are bf16
    # (accumulation and epilogue are f32); structural errors would be O(1).
    max_err = float(jnp.max(jnp.abs(out - ref)))
    assert jnp.allclose(out, ref, atol=5e-2, rtol=5e-2), max_err

    print("KERNEL_OK")
</pallas_src>

<mosaic_0001>
module attributes {stable_mosaic.version = 11 : i64} {
  func.func @_up_doubleconv_kernel(%arg0: i32, %arg1: memref<1x4x256xf32, #tpu.memory_space<vmem>>, %arg2: memref<1x4x64xf32, #tpu.memory_space<vmem>>, %arg3: memref<64x290xf32, #tpu.memory_space<vmem>>, %arg4: memref<8x72xbf16, #tpu.memory_space<vmem>>, %arg5: memref<8x1xf32, #tpu.memory_space<vmem>>, %arg6: memref<4x72xbf16, #tpu.memory_space<vmem>>, %arg7: memref<4x1xf32, #tpu.memory_space<vmem>>, %arg8: memref<1x4x256xf32, #tpu.memory_space<vmem>>, %arg9: memref<8x290xf32, #tpu.memory_space<vmem>>, %arg10: memref<8x290xf32, #tpu.memory_space<vmem>>) attributes {dimension_semantics = [#tpu.dimension_semantics<parallel>], iteration_bounds = array<i64: 2>, scalar_prefetch = 0 : i64, scratch_operands = 2 : i64, tpu.core_type = #tpu.core_type<tc>, window_params = [{transform_indices = @transform_0, window_bounds = array<i64: 1, 4, 256>}, {transform_indices = @transform_1, window_bounds = array<i64: 1, 4, 64>}, {pipeline_mode = #tpu.pipeline_mode<synchronous>, transform_indices = @transform_2, window_bounds = array<i64: 64, 290>}, {pipeline_mode = #tpu.pipeline_mode<synchronous>, transform_indices = @transform_3, window_bounds = array<i64: 8, 72>}, {pipeline_mode = #tpu.pipeline_mode<synchronous>, transform_indices = @transform_4, window_bounds = array<i64: 8, 1>}, {pipeline_mode = #tpu.pipeline_mode<synchronous>, transform_indices = @transform_5, window_bounds = array<i64: 4, 72>}, {pipeline_mode = #tpu.pipeline_mode<synchronous>, transform_indices = @transform_6, window_bounds = array<i64: 4, 1>}, {transform_indices = @transform_7, window_bounds = array<i64: 1, 4, 256>}]} {
    %0 = tpu.iota {dimensions = array<i32: 1>} : vector<1x256xi32>
    %c16_i32 = arith.constant 16 : i32
    %c0_i32 = arith.constant 0 : i32
    %1 = arith.cmpi eq, %c16_i32, %c0_i32 : i32
    %c1_i32 = arith.constant 1 : i32
    %2 = arith.select %1, %c1_i32, %c16_i32 : i32
    %3 = vector.broadcast %2 : i32 to vector<1x256xi32>
    %4 = arith.remsi %0, %3 : vector<1x256xi32>
    %c0_i32_0 = arith.constant 0 : i32
    %5 = vector.broadcast %c0_i32_0 : i32 to vector<1x256xi32>
    %6 = arith.cmpi ne, %4, %5 : vector<1x256xi32>
    %c0_i32_1 = arith.constant 0 : i32
    %7 = vector.broadcast %c0_i32_1 : i32 to vector<1x256xi32>
    %8 = arith.cmpi slt, %4, %7 : vector<1x256xi32>
    %c0_i32_2 = arith.constant 0 : i32
    %9 = arith.cmpi slt, %2, %c0_i32_2 : i32
    %10 = vector.broadcast %9 : i1 to vector<1x256xi1>
    %11 = vector.broadcast %10 : vector<1x256xi1> to vector<1x256xi1>
    %12 = arith.xori %8, %11 : vector<1x256xi1>
    %13 = arith.andi %12, %6 : vector<1x256xi1>
    %14 = vector.broadcast %2 : i32 to vector<1x256xi32>
    %15 = arith.addi %4, %14 : vector<1x256xi32>
    %16 = arith.select %13, %15, %4 : vector<1x256xi1>, vector<1x256xi32>
    %c0_i32_3 = arith.constant 0 : i32
    %17 = vector.broadcast %c0_i32_3 : i32 to vector<1x256xi32>
    %18 = arith.cmpi ne, %16, %17 : vector<1x256xi32>
    %c15_i32 = arith.constant 15 : i32
    %19 = vector.broadcast %c15_i32 : i32 to vector<1x256xi32>
    %20 = arith.cmpi ne, %16, %19 : vector<1x256xi32>
    %cst = arith.constant 0.000000e+00 : f32
    %21 = vector.broadcast %cst : f32 to vector<8x290xf32>
    %c0 = arith.constant 0 : index
    %c0_4 = arith.constant 0 : index
    %22 = vector.load %arg9[%c0, %c0_4] : memref<8x290xf32, #tpu.memory_space<vmem>>, vector<8x290xf32>
    tpu.vector_store %arg9[%c0, %c0_4], %21 {strides = array<i32>} : memref<8x290xf32, #tpu.memory_space<vmem>>, vector<8x290xf32>,
    %c0_5 = arith.constant 0 : index
    %c0_6 = arith.constant 0 : index
    %c0_7 = arith.constant 0 : index
    %23 = vector.load %arg1[%c0_5, %c0_6, %c0_7] : memref<1x4x256xf32, #tpu.memory_space<vmem>>, vector<1x4x256xf32>
    %24 = vector.shape_cast %23 : vector<1x4x256xf32> to vector<4x256xf32>
    %c0_8 = arith.constant 0 : index
    %c17 = arith.constant 17 : index
    %25 = vector.load %arg9[%c0_8, %c17] : memref<8x290xf32, #tpu.memory_space<vmem>>, vector<4x256xf32>
    tpu.vector_store %arg9[%c0_8, %c17], %24 {strides = array<i32>} : memref<8x290xf32, #tpu.memory_space<vmem>>, vector<4x256xf32>,
    %c0_9 = arith.constant 0 : index
    %c0_10 = arith.constant 0 : index
    %c0_11 = arith.constant 0 : index
    %26 = vector.load %arg2[%c0_9, %c0_10, %c0_11] : memref<1x4x64xf32, #tpu.memory_space<vmem>>, vector<1x4x64xf32>
    %27 = vector.shape_cast %26 : vector<1x4x64xf32> to vector<4x64xf32>
    %c0_12 = arith.constant 0 : index
    %c0_13 = arith.constant 0 : index
    %28 = vector.load %arg3[%c0_12, %c0_13] : memref<64x290xf32, #tpu.memory_space<vmem>>, vector<64x290xf32>
    %cst_14 = arith.constant dense<0.000000e+00> : vector<4x290xf32>
    %29 = tpu.matmul %27, %28, %cst_14 {dimension_numbers = #tpu.dot_dimension_numbers<[1], [0], [0], [1], [0, 0, 1, 1], [], []>} : vector<4x64xf32>, vector<64x290xf32>, vector<4x290xf32> -> vector<4x290xf32>
    %c4 = arith.constant 4 : index
    %c0_15 = arith.constant 0 : index
    %30 = vector.load %arg9[%c4, %c0_15] : memref<8x290xf32, #tpu.memory_space<vmem>>, vector<4x290xf32>
    tpu.vector_store %arg9[%c4, %c0_15], %29 {strides = array<i32>} : memref<8x290xf32, #tpu.memory_space<vmem>>, vector<4x290xf32>,
    %c0_16 = arith.constant 0 : index
    %c0_17 = arith.constant 0 : index
    %31 = vector.load %arg4[%c0_16, %c0_17] : memref<8x72xbf16, #tpu.memory_space<vmem>>, vector<8x72xbf16>
    %c0_18 = arith.constant 0 : index
    %c0_19 = arith.constant 0 : index
    %32 = vector.load %arg9[%c0_18, %c0_19] : memref<8x290xf32, #tpu.memory_space<vmem>>, vector<8x256xf32>
    %cst_20 = arith.constant 0.000000e+00 : f32
    %33 = vector.shape_cast %18 : vector<1x256xi1> to vector<1x256xi1>
    %34 = vector.broadcast %33 : vector<1x256xi1> to vector<8x256xi1>
    %35 = vector.broadcast %cst_20 : f32 to vector<8x256xf32>
    %36 = arith.select %34, %32, %35 : vector<8x256xi1>, vector<8x256xf32>
    %c0_21 = arith.constant 0 : index
    %c1 = arith.constant 1 : index
    %37 = vector.load %arg9[%c0_21, %c1] : memref<8x290xf32, #tpu.memory_space<vmem>>, vector<8x256xf32>
    %c0_22 = arith.constant 0 : index
    %c2 = arith.constant 2 : index
    %38 = vector.load %arg9[%c0_22, %c2] : memref<8x290xf32, #tpu.memory_space<vmem>>, vector<8x256xf32>
    %cst_23 = arith.constant 0.000000e+00 : f32
    %39 = vector.shape_cast %20 : vector<1x256xi1> to vector<1x256xi1>
    %40 = vector.broadcast %39 : vector<1x256xi1> to vector<8x256xi1>
    %41 = vector.broadcast %cst_23 : f32 to vector<8x256xf32>
    %42 = arith.select %40, %38, %41 : vector<8x256xi1>, vector<8x256xf32>
    %c0_24 = arith.constant 0 : index
    %c16 = arith.constant 16 : index
    %43 = vector.load %arg9[%c0_24, %c16] : memref<8x290xf32, #tpu.memory_space<vmem>>, vector<8x256xf32>
    %cst_25 = arith.constant 0.000000e+00 : f32
    %44 = vector.shape_cast %18 : vector<1x256xi1> to vector<1x256xi1>
    %45 = vector.broadcast %44 : vector<1x256xi1> to vector<8x256xi1>
    %46 = vector.broadcast %cst_25 : f32 to vector<8x256xf32>
    %47 = arith.select %45, %43, %46 : vector<8x256xi1>, vector<8x256xf32>
    %c0_26 = arith.constant 0 : index
    %c17_27 = arith.constant 17 : index
    %48 = vector.load %arg9[%c0_26, %c17_27] : memref<8x290xf32, #tpu.memory_space<vmem>>, vector<8x256xf32>
    %c0_28 = arith.constant 0 : index
    %c18 = arith.constant 18 : index
    %49 = vector.load %arg9[%c0_28, %c18] : memref<8x290xf32, #tpu.memory_space<vmem>>, vector<8x256xf32>
    %cst_29 = arith.constant 0.000000e+00 : f32
    %50 = vector.shape_cast %20 : vector<1x256xi1> to vector<1x256xi1>
    %51 = vector.broadcast %50 : vector<1x256xi1> to vector<8x256xi1>
    %52 = vector.broadcast %cst_29 : f32 to vector<8x256xf32>
    %53 = arith.select %51, %49, %52 : vector<8x256xi1>, vector<8x256xf32>
    %c0_30 = arith.constant 0 : index
    %c32 = arith.constant 32 : index
    %54 = vector.load %arg9[%c0_30, %c32] : memref<8x290xf32, #tpu.memory_space<vmem>>, vector<8x256xf32>
    %cst_31 = arith.constant 0.000000e+00 : f32
    %55 = vector.shape_cast %18 : vector<1x256xi1> to vector<1x256xi1>
    %56 = vector.broadcast %55 : vector<1x256xi1> to vector<8x256xi1>
    %57 = vector.broadcast %cst_31 : f32 to vector<8x256xf32>
    %58 = arith.select %56, %54, %57 : vector<8x256xi1>, vector<8x256xf32>
    %c0_32 = arith.constant 0 : index
    %c33 = arith.constant 33 : index
    %59 = vector.load %arg9[%c0_32, %c33] : memref<8x290xf32, #tpu.memory_space<vmem>>, vector<8x256xf32>
    %c0_33 = arith.constant 0 : index
    %c34 = arith.constant 34 : index
    %60 = vector.load %arg9[%c0_33, %c34] : memref<8x290xf32, #tpu.memory_space<vmem>>, vector<8x256xf32>
    %cst_34 = arith.constant 0.000000e+00 : f32
    %61 = vector.shape_cast %20 : vector<1x256xi1> to vector<1x256xi1>
    %62 = vector.broadcast %61 : vector<1x256xi1> to vector<8x256xi1>
    %63 = vector.broadcast %cst_34 : f32 to vector<8x256xf32>
    %64 = arith.select %62, %60, %63 : vector<8x256xi1>, vector<8x256xf32>
    %65 = tpu.concatenate %36, %37, %42, %47, %48, %53, %58, %59, %64 in 0 : vector<8x256xf32>, vector<8x256xf32>, vector<8x256xf32>, vector<8x256xf32>, vector<8x256xf32>, vector<8x256xf32>, vector<8x256xf32>, vector<8x256xf32>, vector<8x256xf32> -> vector<72x256xf32>
    %66 = arith.truncf %65 : vector<72x256xf32> to vector<72x256xbf16>
    %cst_35 = arith.constant dense<0.000000e+00> : vector<8x256xf32>
    %67 = tpu.matmul %31, %66, %cst_35 {dimension_numbers = #tpu.dot_dimension_numbers<[1], [0], [0], [1], [0, 0, 1, 1], [], []>} : vector<8x72xbf16>, vector<72x256xbf16>, vector<8x256xf32> -> vector<8x256xf32>
    %c0_36 = arith.constant 0 : index
    %c0_37 = arith.constant 0 : index
    %68 = vector.load %arg5[%c0_36, %c0_37] : memref<8x1xf32, #tpu.memory_space<vmem>>, vector<8x1xf32>
    %69 = vector.broadcast %68 : vector<8x1xf32> to vector<8x256xf32>
    %70 = arith.addf %67, %69 : vector<8x256xf32>
    %cst_38 = arith.constant 0.000000e+00 : f32
    %71 = vector.broadcast %cst_38 : f32 to vector<8x256xf32>
    %72 = arith.maximumf %70, %71 : vector<8x256xf32>
    %cst_39 = arith.constant 0.000000e+00 : f32
    %73 = vector.broadcast %cst_39 : f32 to vector<8x290xf32>
    %c0_40 = arith.constant 0 : index
    %c0_41 = arith.constant 0 : index
    %74 = vector.load %arg10[%c0_40, %c0_41] : memref<8x290xf32, #tpu.memory_space<vmem>>, vector<8x290xf32>
    tpu.vector_store %arg10[%c0_40, %c0_41], %73 {strides = array<i32>} : memref<8x290xf32, #tpu.memory_space<vmem>>, vector<8x290xf32>,
    %c0_42 = arith.constant 0 : index
    %c17_43 = arith.constant 17 : index
    %75 = vector.load %arg10[%c0_42, %c17_43] : memref<8x290xf32, #tpu.memory_space<vmem>>, vector<8x256xf32>
    tpu.vector_store %arg10[%c0_42, %c17_43], %72 {strides = array<i32>} : memref<8x290xf32, #tpu.memory_space<vmem>>, vector<8x256xf32>,
    %c0_44 = arith.constant 0 : index
    %c0_45 = arith.constant 0 : index
    %76 = vector.load %arg6[%c0_44, %c0_45] : memref<4x72xbf16, #tpu.memory_space<vmem>>, vector<4x72xbf16>
    %c0_46 = arith.constant 0 : index
    %c0_47 = arith.constant 0 : index
    %77 = vector.load %arg10[%c0_46, %c0_47] : memref<8x290xf32, #tpu.memory_space<vmem>>, vector<8x256xf32>
    %cst_48 = arith.constant 0.000000e+00 : f32
    %78 = vector.shape_cast %18 : vector<1x256xi1> to vector<1x256xi1>
    %79 = vector.broadcast %78 : vector<1x256xi1> to vector<8x256xi1>
    %80 = vector.broadcast %cst_48 : f32 to vector<8x256xf32>
    %81 = arith.select %79, %77, %80 : vector<8x256xi1>, vector<8x256xf32>
    %c0_49 = arith.constant 0 : index
    %c1_50 = arith.constant 1 : index
    %82 = vector.load %arg10[%c0_49, %c1_50] : memref<8x290xf32, #tpu.memory_space<vmem>>, vector<8x256xf32>
    %c0_51 = arith.constant 0 : index
    %c2_52 = arith.constant 2 : index
    %83 = vector.load %arg10[%c0_51, %c2_52] : memref<8x290xf32, #tpu.memory_space<vmem>>, vector<8x256xf32>
    %cst_53 = arith.constant 0.000000e+00 : f32
    %84 = vector.shape_cast %20 : vector<1x256xi1> to vector<1x256xi1>
    %85 = vector.broadcast %84 : vector<1x256xi1> to vector<8x256xi1>
    %86 = vector.broadcast %cst_53 : f32 to vector<8x256xf32>
    %87 = arith.select %85, %83, %86 : vector<8x256xi1>, vector<8x256xf32>
    %c0_54 = arith.constant 0 : index
    %c16_55 = arith.constant 16 : index
    %88 = vector.load %arg10[%c0_54, %c16_55] : memref<8x290xf32, #tpu.memory_space<vmem>>, vector<8x256xf32>
    %cst_56 = arith.constant 0.000000e+00 : f32
    %89 = vector.shape_cast %18 : vector<1x256xi1> to vector<1x256xi1>
    %90 = vector.broadcast %89 : vector<1x256xi1> to vector<8x256xi1>
    %91 = vector.broadcast %cst_56 : f32 to vector<8x256xf32>
    %92 = arith.select %90, %88, %91 : vector<8x256xi1>, vector<8x256xf32>
    %c0_57 = arith.constant 0 : index
    %c17_58 = arith.constant 17 : index
    %93 = vector.load %arg10[%c0_57, %c17_58] : memref<8x290xf32, #tpu.memory_space<vmem>>, vector<8x256xf32>
    %c0_59 = arith.constant 0 : index
    %c18_60 = arith.constant 18 : index
    %94 = vector.load %arg10[%c0_59, %c18_60] : memref<8x290xf32, #tpu.memory_space<vmem>>, vector<8x256xf32>
    %cst_61 = arith.constant 0.000000e+00 : f32
    %95 = vector.shape_cast %20 : vector<1x256xi1> to vector<1x256xi1>
    %96 = vector.broadcast %95 : vector<1x256xi1> to vector<8x256xi1>
    %97 = vector.broadcast %cst_61 : f32 to vector<8x256xf32>
    %98 = arith.select %96, %94, %97 : vector<8x256xi1>, vector<8x256xf32>
    %c0_62 = arith.constant 0 : index
    %c32_63 = arith.constant 32 : index
    %99 = vector.load %arg10[%c0_62, %c32_63] : memref<8x290xf32, #tpu.memory_space<vmem>>, vector<8x256xf32>
    %cst_64 = arith.constant 0.000000e+00 : f32
    %100 = vector.shape_cast %18 : vector<1x256xi1> to vector<1x256xi1>
    %101 = vector.broadcast %100 : vector<1x256xi1> to vector<8x256xi1>
    %102 = vector.broadcast %cst_64 : f32 to vector<8x256xf32>
    %103 = arith.select %101, %99, %102 : vector<8x256xi1>, vector<8x256xf32>
    %c0_65 = arith.constant 0 : index
    %c33_66 = arith.constant 33 : index
    %104 = vector.load %arg10[%c0_65, %c33_66] : memref<8x290xf32, #tpu.memory_space<vmem>>, vector<8x256xf32>
    %c0_67 = arith.constant 0 : index
    %c34_68 = arith.constant 34 : index
    %105 = vector.load %arg10[%c0_67, %c34_68] : memref<8x290xf32, #tpu.memory_space<vmem>>, vector<8x256xf32>
    %cst_69 = arith.constant 0.000000e+00 : f32
    %106 = vector.shape_cast %20 : vector<1x256xi1> to vector<1x256xi1>
    %107 = vector.broadcast %106 : vector<1x256xi1> to vector<8x256xi1>
    %108 = vector.broadcast %cst_69 : f32 to vector<8x256xf32>
    %109 = arith.select %107, %105, %108 : vector<8x256xi1>, vector<8x256xf32>
    %110 = tpu.concatenate %81, %82, %87, %92, %93, %98, %103, %104, %109 in 0 : vector<8x256xf32>, vector<8x256xf32>, vector<8x256xf32>, vector<8x256xf32>, vector<8x256xf32>, vector<8x256xf32>, vector<8x256xf32>, vector<8x256xf32>, vector<8x256xf32> -> vector<72x256xf32>
    %111 = arith.truncf %110 : vector<72x256xf32> to vector<72x256xbf16>
    %cst_70 = arith.constant dense<0.000000e+00> : vector<4x256xf32>
    %112 = tpu.matmul %76, %111, %cst_70 {dimension_numbers = #tpu.dot_dimension_numbers<[1], [0], [0], [1], [0, 0, 1, 1], [], []>} : vector<4x72xbf16>, vector<72x256xbf16>, vector<4x256xf32> -> vector<4x256xf32>
    %c0_71 = arith.constant 0 : index
    %c0_72 = arith.constant 0 : index
    %113 = vector.load %arg7[%c0_71, %c0_72] : memref<4x1xf32, #tpu.memory_space<vmem>>, vector<4x1xf32>
    %114 = vector.broadcast %113 : vector<4x1xf32> to vector<4x256xf32>
    %115 = arith.addf %112, %114 : vector<4x256xf32>
    %cst_73 = arith.constant 0.000000e+00 : f32
    %116 = vector.broadcast %cst_73 : f32 to vector<4x256xf32>
    %117 = arith.maximumf %115, %116 : vector<4x256xf32>
    %c0_74 = arith.constant 0 : index
    %c0_75 = arith.constant 0 : index
    %c0_76 = arith.constant 0 : index
    %118 = vector.load %arg8[%c0_74, %c0_75, %c0_76] : memref<1x4x256xf32, #tpu.memory_space<vmem>>, vector<1x4x256xf32>
    %119 = vector.shape_cast %118 : vector<1x4x256xf32> to vector<4x256xf32>
    %120 = vector.shape_cast %117 : vector<4x256xf32> to vector<1x4x256xf32>
    tpu.vector_store %arg8[%c0_74, %c0_75, %c0_76], %120 {strides = array<i32>} : memref<1x4x256xf32, #tpu.memory_space<vmem>>, vector<1x4x256xf32>,
    return
  }
  func.func @transform_0(%arg0: i32) -> (i32, i32, i32) {
    %c0_i32 = arith.constant 0 : i32
    %c0_i32_0 = arith.constant 0 : i32
    %c0_i32_1 = arith.constant 0 : i32
    return %arg0, %c0_i32, %c0_i32_0 : i32, i32, i32
  }
  func.func @transform_1(%arg0: i32) -> (i32, i32, i32) {
    %c0_i32 = arith.constant 0 : i32
    %c0_i32_0 = arith.constant 0 : i32
    %c0_i32_1 = arith.constant 0 : i32
    return %arg0, %c0_i32, %c0_i32_0 : i32, i32, i32
  }
  func.func @transform_2(%arg0: i32) -> (i32, i32) {
    %c0_i32 = arith.constant 0 : i32
    %c0_i32_0 = arith.constant 0 : i32
    %c0_i32_1 = arith.constant 0 : i32
    return %c0_i32, %c0_i32_0 : i32, i32
  }
  func.func @transform_3(%arg0: i32) -> (i32, i32) {
    %c0_i32 = arith.constant 0 : i32
    %c0_i32_0 = arith.constant 0 : i32
    %c0_i32_1 = arith.constant 0 : i32
    return %c0_i32, %c0_i32_0 : i32, i32
  }
  func.func @transform_4(%arg0: i32) -> (i32, i32) {
    %c0_i32 = arith.constant 0 : i32
    %c0_i32_0 = arith.constant 0 : i32
    %c0_i32_1 = arith.constant 0 : i32
    return %c0_i32, %c0_i32_0 : i32, i32
  }
  func.func @transform_5(%arg0: i32) -> (i32, i32) {
    %c0_i32 = arith.constant 0 : i32
    %c0_i32_0 = arith.constant 0 : i32
    %c0_i32_1 = arith.constant 0 : i32
    return %c0_i32, %c0_i32_0 : i32, i32
  }
  func.func @transform_6(%arg0: i32) -> (i32, i32) {
    %c0_i32 = arith.constant 0 : i32
    %c0_i32_0 = arith.constant 0 : i32
    %c0_i32_1 = arith.constant 0 : i32
    return %c0_i32, %c0_i32_0 : i32, i32
  }
  func.func @transform_7(%arg0: i32) -> (i32, i32, i32) {
    %c0_i32 = arith.constant 0 : i32
    %c0_i32_0 = arith.constant 0 : i32
    %c0_i32_1 = arith.constant 0 : i32
    return %arg0, %c0_i32, %c0_i32_0 : i32, i32, i32
  }
}

</mosaic_0001>

<bundles_post_ra>
// kernel: up_forward.1
= control target key start
LH: loop header
LB: loop body
LE: loop exit
PB: predicated region body
PF: predicated region fallthrough
CT: control target
= control target key end

     0   :  { %s1263_s24 = smov 0   ;;  %s1591_s0 = inlined_call_operand.vmem [shape: f32[2,4,256], index: 0, kind: input, shape index: {}]   ;;  %s1592_s1 = inlined_call_operand.vmem [shape: f32[2,4,64], index: 1, kind: input, shape index: {}]   ;;  %s1593_s2 = inlined_call_operand.vmem [shape: f32[64,290], index: 2, kind: input, shape index: {}]   ;;  %s1594_s3 = inlined_call_operand.vmem [shape: bf16[8,72], index: 3, kind: input, shape index: {}]   ;;  %s1595_s4 = inlined_call_operand.vmem [shape: f32[8,1], index: 4, kind: input, shape index: {}]   ;;  %s1596_s5 = inlined_call_operand.vmem [shape: bf16[4,72], index: 5, kind: input, shape index: {}]   ;;  %s1597_s6 = inlined_call_operand.vmem [shape: f32[4,1], index: 6, kind: input, shape index: {}]   ;;  %s1598_s7 = inlined_call_operand.vmem [shape: f32[2,4,256], index: 7, kind: output, shape index: {}]  }
   0x1 LB: > { %s973_s25 = sadd.s32 4294967295, %s1207_s24   ;;  %p977_p0 = scmp.ge.s32.totalorder %s1207_s24, 1  ;;  %s1207_s24 = sphi %s1263_s24, %s17_s24  }
   0x2   : > { %p246_p1 = scmp.lt.s32.totalorder %s1207_s24, 3 }
   0x4   : > { %p247_p2 = pnand %p977_p0, %p246_p1 }
   0x5   : > { %v351_v0 = vld [vmem:[%s1593_s2 + $0x8] sm:$0xff] (!%p247_p2)  ;;  %v354_v1 = vld [vmem:[%s1593_s2 + $0x20] sm:$0xff] (!%p247_p2)  ;;  %p1280_p3 = scmp.lt.s32.totalorder (!%p247_p2), %s973_s25, 1  ;;  %v353_v4 = vld [vmem:[%s1593_s2 + $0x18] sm:$0xff] (!%p247_p2)  ;;  %v1209_v5 = vmov (!%p247_p2), 0.0|0.0   ;;  %v1210_v8 = vmov (!%p247_p2), 0.0   ;;  %v297_v60 = vlaneseq (!%p247_p2) }
   0x6   : > { %250 = sbr.rel (%p247_p2) target bundleno = 1114 (0x45a), region = 48  ;;  %v350_v2 = vld [vmem:[%s1593_s2] sm:$0xff] (!%p247_p2)  ;;  %v1069_v3 = vpack.c.bf16 (!%p247_p2), %v354_v1, %v351_v0  ;;  %1085 = vmatprep.subr.bf16.mxu1 (!%p247_p2), %v1209_v5  ;;  %v352_v6 = vld [vmem:[%s1593_s2 + $0x10] sm:$0xff] (!%p247_p2)  ;;  %v355_v7 = vld [vmem:[%s1593_s2 + $0x28] sm:$0xff] (!%p247_p2)  ;;  %442 = vmatprep.mubr.f32.mxu0 (!%p247_p2), %v1210_v8  ;;  %328 = vst [vmem:[#allocation2] sm:$0xff] (!%p247_p2), %v1210_v8  ;;  %vm1211_vm0 = vmmov (!%p247_p2), 0  }
   0x7   : > { %329 = vst [vmem:[#allocation2 + $0x8] sm:$0xff] (!%p247_p2), %v1210_v8  ;;  %717 = vst [vmem:[#allocation3] sm:$0xff] (!%p247_p2), %v1210_v8  ;;  %v1071_v9 = vpack.c.bf16 (!%p247_p2), %v353_v4, %v350_v2  ;;  %v1086_v10 = vpack.c.bf16 (!%p247_p2), %v355_v7, %v352_v6  ;;  %v357_v11 = vld [vmem:[%s1593_s2 + $0x38] sm:$0xff] (!%p247_p2)  ;;  %v360_v12 = vld [vmem:[%s1593_s2 + $0x50] sm:$0xff] (!%p247_p2)  ;;  %1066 = vmatprep.mubr.msk.f32.mxu1 (!%p247_p2), %vm1211_vm0, %v1210_v8  ;;  %s1212_s16 = smov (!%p247_p2), 17   ;;  %vm374_vm1 = vcmask (!%p247_p2), 523264  }
   0x8   : > { %v356_v13 = vld [vmem:[%s1593_s2 + $0x30] sm:$0xff] (!%p247_p2)  ;;  %1070 = vmatprep.subr.bf16.mxu0 (!%p247_p2), %v1069_v3  ;;  %v1073_v14 = vpack.c.bf16 (!%p247_p2), %v360_v12, %v357_v11  ;;  %v359_v15 = vld [vmem:[%s1593_s2 + $0x48] sm:$0xff] (!%p247_p2)  ;;  %v358_v16 = vld [vmem:[%s1593_s2 + $0x40] sm:$0xff] (!%p247_p2)  ;;  %vm330_vm2 = vcmask (!%p247_p2), 277504   ;;  %vm344_vm3 = vcmask (!%p247_p2), 1043592   ;;  %vm339_vm4 = vcmask (!%p247_p2), 138240  }
   0x9   : > { %v361_v17 = vld [vmem:[%s1593_s2 + $0x58] sm:$0xff] (!%p247_p2)  ;;  %1072 = vmatpush1.bf16.msra.mxu0 (!%p247_p2), %v1071_v9  ;;  %1087 = vmatpush3.bf16.msra.mxu1 (!%p247_p2), %v1086_v10  ;;  %v1075_v18 = vpack.c.bf16 (!%p247_p2), %v359_v15, %v356_v13  ;;  %v363_v20 = vld [vmem:[%s1593_s2 + $0x68] sm:$0xff] (!%p247_p2)  ;;  %v366_v21 = vld [vmem:[%s1593_s2 + $0x80] sm:$0xff] (!%p247_p2)  ;;  %331 = vst.msk [vmem:[#allocation2 + $0x10] sm:$0xff] (!%p247_p2), %vm330_vm2, %v1210_v8  ;;  %vm347_vm5 = vcmask (!%p247_p2), 134144   ;;  %vm530_vm6 = vcmask (!%p247_p2), 277508  }
   0xa   : > { %v1089_v19 = vpack.c.bf16 (!%p247_p2), %v361_v17, %v358_v16  ;;  %v362_v22 = vld [vmem:[%s1593_s2 + $0x60] sm:$0xff] (!%p247_p2)  ;;  %1074 = vmatprep.subr.bf16.mxu0 (!%p247_p2), %v1073_v14  ;;  %1088 = vmatprep.subr.bf16.mxu1 (!%p247_p2), %v1209_v5  ;;  %v1077_v23 = vpack.c.bf16 (!%p247_p2), %v366_v21, %v363_v20  ;;  %v365_v24 = vld [vmem:[%s1593_s2 + $0x78] sm:$0xff] (!%p247_p2)  ;;  %v364_v25 = vld [vmem:[%s1593_s2 + $0x70] sm:$0xff] (!%p247_p2)  ;;  %719 = vst.msk [vmem:[#allocation3 + $0x10] sm:$0xff] (!%p247_p2), %vm330_vm2, %v1210_v8  ;;  %s1213_s20 = smov (!%p247_p2), 127   ;;  %s1214_s21 = smov (!%p247_p2), 126  }
   0xb   : > { %v367_v26 = vld [vmem:[%s1593_s2 + $0x88] sm:$0xff] (!%p247_p2)  ;;  %v369_v27 = vld [vmem:[%s1593_s2 + $0x98] sm:$0xff] (!%p247_p2)  ;;  %v372_v28 = vld [vmem:[%s1593_s2 + $0xb0] sm:$0xff] (!%p247_p2)  ;;  %v1079_v29 = vpack.c.bf16 (!%p247_p2), %v365_v24, %v362_v22  ;;  %s1216_s23 = smov (!%p247_p2), 110   ;;  %s1217_s26 = smov (!%p247_p2), 111   ;;  %v1221_v56 = vmov (!%p247_p2), 0  }
   0xc   : > { %v1092_v30 = vpack.c.bf16 (!%p247_p2), %v367_v26, %v364_v25  ;;  %v368_v31 = vld [vmem:[%s1593_s2 + $0x90] sm:$0xff] (!%p247_p2)  ;;  %v1081_v33 = vpack.c.bf16 (!%p247_p2), %v372_v28, %v369_v27  ;;  %v371_v34 = vld [vmem:[%s1593_s2 + $0xa8] sm:$0xff] (!%p247_p2)  ;;  %v370_v35 = vld [vmem:[%s1593_s2 + $0xa0] sm:$0xff] (!%p247_p2)  ;;  %s1218_s27 = smov (!%p247_p2), 96   ;;  %s1219_s28 = smov (!%p247_p2), 95   ;;  %1159 = vset.pattern.permute.xlu0 (!%p247_p2), %v1221_v56  ;;  %v298_v63 = vand.u32 (!%p247_p2), 127, %v297_v60 }
   0xd   : > { %s1640_s25 = smov (!%p1280_p3, %s973_s25), 1  ;;  %1076 = vmatpush1.bf16.msra.mxu0 %v1075_v18  ;;  %1090 = vmatpush3.bf16.msra.mxu1 %v1089_v19  ;;  %v373_v36 = vld [vmem:[%s1593_s2 + $0xb8] sm:$0xff]  ;;  %v1083_v38 = vpack.c.bf16 %v371_v34, %v368_v31  ;;  %s1220_s29 = smov 94   ;;  %v657_v57 = vld [vmem:[%s1595_s4] sm:$0xff]  ;;  %vm620_vm7 = vcmask 1039360   ;;  %vm1600_vm10 = vcmask 1031168  }
   0xe   : > { %s1039_s13 = sshll.u32 %s1640_s25, 3  ;;  %1078 = vmatprep.subr.bf16.mxu0 %v1077_v23  ;;  %1091 = vmatprep.subr.bf16.mxu1 %v1209_v5  ;;  %s980_s15 = sshll.u32 %s1640_s25, 2  ;;  %v1095_v39 = vpack.c.bf16 %v373_v36, %v370_v35  ;;  %v299_v2 = vadd.s32 128, %v298_v63  ;;  %v304_v6 = vand.u32 15, %v298_v63  ;;  %vm1222_vm11 = vmmov 1  }
   0xf   : > { %s286_s22 = scalar_lea.vmem %s1591_s0, %s1039_s13  ;;  %s290_s19 = scalar_lea.vmem %s1592_s1, %s980_s15  ;;  %vm1599_vm13 = vcmask 916480  }
  0x10   : > { %v332_v32 = vld [vmem:[%s286_s22] sm:$0xff]  ;;  %s1215_s22 = smov 112   ;;  %vm1412_vm9 = vcmp.ne.s32.totalorder %v304_v6, 0  ;;  %vm1438_vm0 = vcmp.ne.s32.totalorder %v304_v6, 15  ;;  %s295_s18 = scalar_lea.vmem %s1598_s7, %s1039_s13 }
  0x11   : > { %335 = vrot.lane.b32.xlu0 %v332_v32, %s1212_s16  ;;  %v334_v37 = vcombine.high %v332_v32, %v332_v32  ;;  %1080 = vmatpush1.bf16.msra.mxu0 %v1079_v29  ;;  %v349_v40 = vld [vmem:[%s290_s19] sm:$0xf]  ;;  %vm1430_vm14 = vmpackc.low %vm1222_vm11, %vm1412_vm9 }
  0x12   : > { %1093 = vmatpush3.bf16.msra.mxu1 %v1092_v30  ;;  %1082 = vmatprep.subr.bf16.mxu0 %v1081_v33 }
  0x13   : > { %1094 = vmatprep.subr.bf16.mxu1 %v1209_v5  ;;  %v311_v5 = vand.u32 15, %v299_v2 }
  0x15   : > { %337 = vrot.lane.b32.xlu0 %v334_v37, %s1212_s16  ;;  %1084 = vmatpush1.bf16.msra.mxu0 %v1083_v38  ;;  %vm1408_vm8 = vcmp.ne.s32.totalorder %v311_v5, 0  ;;  %vm1434_vm15 = vcmp.ne.s32.totalorder %v311_v5, 15 }
  0x16   : > { %1096 = vmatpush3.bf16.msra.mxu1 %v1095_v39  ;;  %vm1421_vm12 = vmpackc.low %vm1222_vm11, %vm1408_vm8 }
  0x17   : > { %vm991_vm2 = vmpackc.low %vm1408_vm8, %vm1434_vm15  ;;  %vm1632_vm8 = vcmask 777216  }
  0x18   : > { %983 = vmatmul.mubr.msk.f32.vlgmr.msra.gmra.mrb[0].mxu0 %vm374_vm1, %v349_v40 }
  0x19   : > { %1067 = vmatmul.mubr.msk.f32.vlgmr.msra.gmra.mrb[0].mxu1 %vm374_vm1, %v349_v40  ;;  %706 = vmatprep.mubr.bf16.mxu0 %v1221_v56  ;;  %vm1601_vm1 = vcmask 900096  }
  0x1a   : > { %890 = vmatprep.mubr.bf16.mxu1 %v1221_v56 }
  0x83   : > { %v336_v41 = vpop.permute.xlu0 %335 }
  0x84   : > { %345 = vst.msk [vmem:[#allocation2] sm:$0xf] %vm344_vm3, %v336_v41  ;;  %vm1602_vm3 = vcmask 908288  }
  0x87   : > { %v338_v42 = vpop.permute.xlu0 %337 }
  0x88   : > { %v340_v43 = vsel %vm339_vm4, %v336_v41, %v338_v42  ;;  %348 = vst.msk [vmem:[#allocation2 + $0x10] sm:$0xf] %vm347_vm5, %v338_v42  ;;  %vm994_vm5 = vmpackc.low %vm1412_vm9, %vm1438_vm0  ;;  %vm1634_vm9 = vcmask 769024  }
  0x89   : > { %346 = vst [vmem:[#allocation2 + $0x8] sm:$0xf] %v340_v43 }
  0xeb   : > { %v444_v44 = vpop.f32.mrb[0].mxu0 }
  0xec   : > { %v515_v45 = vpop.f32.mrb[0].mxu1  ;;  %v522_v46 = vrot.slane %v444_v44, 4  ;;  %v446_v47 = vpop.f32.mrb[1].mxu0 }
  0xed   : > { %v524_v48 = vrot.slane %v515_v45, 4  ;;  %v1068_v49 = vpop.f32.mrb[1].mxu1  ;;  %v523_v50 = vrot.slane %v446_v47, 4 }
  0xee   : > { %528 = vst [vmem:[#allocation2] sm:$0xf0] %v522_v46 }
  0xef   : > { %531 = vst.msk [vmem:[#allocation2 + $0x10] sm:$0xf0] %vm530_vm6, %v524_v48  ;;  %529 = vst [vmem:[#allocation2 + $0x8] sm:$0xf0] %v523_v50  ;;  %vm1603_vm6 = vcmask 769024  }
  0xf5   : > { %v1371_v51 = vld [vmem:[#allocation2] sm:$0xff] }
  0xf6   : > { %614 = vrot.lane.b32.xlu1 %v1371_v51, %s1213_s20  ;;  %549 = vrot.lane.b32.xlu0 %v1371_v51, %s1214_s21  ;;  %v1381_v52 = vld [vmem:[#allocation2 + $0x8] sm:$0xff]  ;;  %v541_v53 = vld [vmem:[#allocation2 + $0x10] sm:$0xff] }
  0xf7   : > { %v1124_v54 = vpack.i.bf16 %v541_v53, %v1381_v52  ;;  %v1154_v55 = vpack.i.bf16 %v1381_v52, %v1371_v51 }
  0xfa   : > { %562 = vrot.lane.b32.xlu1 %v1371_v51, %s1215_s22  ;;  %575 = vrot.lane.b32.xlu0 %v1371_v51, %s1216_s23 }
  0xfe   : > { %625 = vrot.lane.b32.xlu1 %v1371_v51, %s1217_s26  ;;  %588 = vrot.lane.b32.xlu0 %v1371_v51, %s1218_s27 }
 0x102   : > { %636 = vrot.lane.b32.xlu1 %v1371_v51, %s1219_s28  ;;  %1125 = vrot.lane.b32.xlu0 %v1124_v54, %s1214_s21 }
 0x106   : > { %1135 = vrot.lane.b32.xlu0 %v1124_v54, %s1216_s23  ;;  %1120 = vrot.lane.b32.xlu1 %v1124_v54, %s1213_s20 }
 0x10a   : > { %1145 = vrot.lane.b32.xlu0 %v1124_v54, %s1218_s27  ;;  %1130 = vrot.lane.b32.xlu1 %v1124_v54, %s1215_s22 }
 0x10e   : > { %1155 = vrot.lane.b32.xlu0 %v1154_v55, %s1220_s29  ;;  %1140 = vrot.lane.b32.xlu1 %v1124_v54, %s1217_s26 }
 0x112   : > { %1150 = vrot.lane.b32.xlu1 %v1124_v54, %s1219_s28  ;;  %660 = vperm.xlu0 %1159, %v657_v57  }
 0x116   : > { %605 = vrot.lane.b32.xlu1 %v541_v53, %s1220_s29 }
 0x168   : > { %v615_v58 = vpop.permute.xlu1 %614  ;;  %v550_v59 = vpop.permute.xlu0 %549 }
 0x16c   : > { %v563_v61 = vpop.permute.xlu1 %562  ;;  %v576_v62 = vpop.permute.xlu0 %575 }
 0x170   : > { %v626_v0 = vpop.permute.xlu1 %625  ;;  %v1404_v1 = vpop.permute.xlu0 %588 }
 0x174   : > { %v1406_v3 = vpop.permute.xlu1 %636  ;;  %v1126_v4 = vpop.permute.xlu0 %1125 }
 0x175   : > { %v1127_v13 = vunpack.i.l.bf16 %v1126_v4  ;;  %v1128_v14 = vunpack.i.h.bf16 %v1126_v4  ;;  %v532_v4 = vld [vmem:[%s1594_s3] sm:$0xf] }
 0x177   : > { %v556_v27 = vsel %vm1600_vm10, %v550_v59, %v1127_v13  ;;  %v557_v29 = vsel %vm1600_vm10, %v1127_v13, %v1128_v14  ;;  %vm1475_vm10 = vmpackc.low %vm1434_vm15, %vm1222_vm11 }
 0x178   : > { %v1121_v7 = vpop.permute.xlu1 %1120  ;;  %v1136_v8 = vpop.permute.xlu0 %1135 }
 0x179   : > { %v1123_v10 = vunpack.i.h.bf16 %v1121_v7  ;;  %v1122_v11 = vunpack.i.l.bf16 %v1121_v7  ;;  %v1137_v28 = vunpack.i.l.bf16 %v1136_v8  ;;  %v1138_v30 = vunpack.i.h.bf16 %v1136_v8 }
 0x17b   : > { %v621_v15 = vsel %vm620_vm7, %v615_v58, %v1122_v11  ;;  %v622_v16 = vsel %vm620_vm7, %v1122_v11, %v1123_v10  ;;  %v582_v41 = vsel %vm1601_vm1, %v576_v62, %v1137_v28  ;;  %v583_v43 = vsel %vm1601_vm1, %v1137_v28, %v1138_v30 }
 0x17c   : > { %v986_v18 = vpack.c.bf16 %v622_v16, %v1381_v52  ;;  %v989_v19 = vpack.c.bf16 %v621_v15, %v1371_v51  ;;  %v1131_v20 = vpop.permute.xlu1 %1130  ;;  %v1146_v21 = vpop.permute.xlu0 %1145  ;;  %vm1606_vm1 = vcmask 777216  }
 0x17d   : > { %v1133_v24 = vunpack.i.h.bf16 %v1131_v20  ;;  %v1132_v25 = vunpack.i.l.bf16 %v1131_v20  ;;  %v1147_v42 = vunpack.i.l.bf16 %v1146_v21  ;;  %v1148_v44 = vunpack.i.h.bf16 %v1146_v21 }
 0x17e   : > { %987 = vmatprep.subr.msk.bf16.mxu0 %vm1421_vm12, %v986_v18 }
 0x17f   : > { %v569_v31 = vsel %vm1599_vm13, %v563_v61, %v1132_v25  ;;  %v570_v32 = vsel %vm1599_vm13, %v1132_v25, %v1133_v24  ;;  %990 = vmatpush1.bf16.msk.msra.mxu0 %vm1430_vm14, %v989_v19  ;;  %vm594_vm13 = vcmask 785408  }
 0x180   : > { %v992_v33 = vpack.c.bf16 %v570_v32, %v557_v29  ;;  %v995_v34 = vpack.c.bf16 %v569_v31, %v556_v27  ;;  %v1141_v35 = vpop.permute.xlu1 %1140  ;;  %v1156_v36 = vpop.permute.xlu0 %1155  ;;  %v595_v55 = vsel %vm594_vm13, %v1404_v1, %v1147_v42  ;;  %v596_v56 = vsel %vm594_vm13, %v1147_v42, %v1148_v44  ;;  %v843_v27 = vld [vmem:[%s1597_s6] sm:$0xf] }
 0x181   : > { %v1143_v37 = vunpack.i.h.bf16 %v1141_v35  ;;  %v1142_v38 = vunpack.i.l.bf16 %v1141_v35  ;;  %v1158_v39 = vunpack.i.h.bf16 %v1156_v36  ;;  %v1157_v40 = vunpack.i.l.bf16 %v1156_v36 }
 0x182   : > { %993 = vmatprep.subr.msk.bf16.mxu0 %vm991_vm2, %v992_v33 }
 0x183   : > { %v632_v45 = vsel %vm1602_vm3, %v626_v0, %v1142_v38  ;;  %v633_v46 = vsel %vm1602_vm3, %v1142_v38, %v1143_v37  ;;  %996 = vmatpush1.bf16.msk.msra.mxu0 %vm994_vm5, %v995_v34  ;;  %vm1482_vm3 = vmpackc.low %vm1438_vm0, %vm1222_vm11  ;;  %v608_v52 = vsel %vm1603_vm6, %v1157_v40, %v1158_v39  ;;  %vm1604_vm11 = vcmask 1043456  }
 0x184   : > { %v998_v48 = vpack.c.bf16 %v583_v43, %v633_v46  ;;  %v1001_v49 = vpack.c.bf16 %v582_v41, %v632_v45  ;;  %v1151_v50 = vpop.permute.xlu1 %1150  ;;  %v612_v59 = vsel %vm1438_vm0, %v608_v52, 0.0 }
 0x185   : > { %v1153_v53 = vunpack.i.h.bf16 %v1151_v50  ;;  %v1152_v54 = vunpack.i.l.bf16 %v1151_v50  ;;  %v655_v1 = vpack.c.bf16 %v612_v59, %v612_v59 }
 0x186   : > { %999 = vmatprep.subr.msk.bf16.mxu0 %vm1475_vm10, %v998_v48 }
 0x187   : > { %v643_v57 = vsel %vm1606_vm1, %v1406_v3, %v1152_v54  ;;  %v644_v58 = vsel %vm1606_vm1, %v1152_v54, %v1153_v53  ;;  %1002 = vmatpush1.bf16.msk.msra.mxu0 %vm1482_vm3, %v1001_v49  ;;  %v669_v3 = vsel %vm1604_vm11, %v655_v1, 0 }
 0x188   : > { %v1004_v60 = vpack.c.bf16 %v644_v58, %v596_v56  ;;  %v1007_v61 = vpack.c.bf16 %v643_v57, %v595_v55  ;;  %v606_v62 = vpop.permute.xlu1 %605 }
 0x189   : > { %v609_v63 = vsel %vm1603_vm6, %v1158_v39, %v606_v62  ;;  %vm1605_vm6 = vcmask 588800  }
 0x18a   : > { %v613_v0 = vsel %vm1434_vm15, %v609_v63, 0.0  ;;  %1005 = vmatprep.subr.msk.bf16.mxu0 %vm1421_vm12, %v1004_v60 }
 0x18b   : > { %v656_v2 = vpack.c.bf16 %v613_v0, %v613_v0  ;;  %1008 = vmatpush1.bf16.msk.msra.mxu0 %vm1430_vm14, %v1007_v61 }
 0x18d   : > { %1009 = vmatprep.subr.msk.bf16.mxu0 %vm1604_vm11, %v656_v2  ;;  %vm730_vm11 = vcmask 1047688  }
 0x18f   : > { %683 = vmatpush1.bf16.msra.mxu0 %v669_v3 }
 0x191   : > { %v661_v5 = vpop.permute.xlu0 %660 }
 0x192   : > { %1010 = vmatmul.mubr.msk.bf16.vlgmr.msra.gmra.mrb[4].mxu0 %vm1605_vm6, %v532_v4  ;;  %vm1626_vm6 = vcmask 916480  }
 0x193   : > { %vm1627_vm1 = vmmov %vm1626_vm6 }
 0x265   : > { %v708_v6 = vpop.f32.mrb[4].mxu0 }
 0x266   : > { %v709_v7 = vadd.f32 %v708_v6, %v661_v5  ;;  %v710_v8 = vpop.f32.mrb[5].mxu0 }
 0x267   : > { %v712_v10 = vpop.f32.mrb[6].mxu0  ;;  %v711_v13 = vadd.f32 %v710_v8, %v661_v5 }
 0x268   : > { %v715_v11 = vmax.f32 %v709_v7, 0.0  ;;  %v713_v14 = vpop.f32.mrb[7].mxu0 }
 0x269   : > { %v716_v15 = vmax.f32 %v711_v13, 0.0 }
 0x26a   : > { %722 = vrot.lane.b32.xlu1 %v715_v11, %s1212_s16 }
 0x26e   : > { %724 = vrot.lane.b32.xlu1 %v716_v15, %s1212_s16 }
 0x2dc   : > { %v723_v16 = vpop.permute.xlu1 %722 }
 0x2dd   : > { %731 = vst.msk [vmem:[#allocation3] sm:$0xff] %vm730_vm11, %v723_v16 }
 0x2e0   : > { %v725_v18 = vpop.permute.xlu1 %724 }
 0x2e1   : > { %v726_v19 = vsel %vm339_vm4, %v723_v16, %v725_v18  ;;  %733 = vst.msk [vmem:[#allocation3 + $0x10] sm:$0xff] %vm339_vm4, %v725_v18  ;;  %vm1624_vm4 = vcmask 1031168  }
 0x2e2   : > { %vm1625_vm11 = vmmov %vm1624_vm4 }
 0x2e4   : > { %v735_v20 = vld [vmem:[#allocation3] sm:$0xff] }
 0x2e5   : > { %743 = vrot.lane.b32.xlu0 %v735_v20, %s1214_s21  ;;  %803 = vrot.lane.b32.xlu1 %v735_v20, %s1213_s20  ;;  %v1195_v25 = vpack.i.bf16 %v726_v19, %v735_v20 }
 0x2e8   : > { %v739_v21 = vld [vmem:[#allocation3 + $0x10] sm:$0xff] }
 0x2e9   : > { %767 = vrot.lane.b32.xlu0 %v735_v20, %s1216_s23  ;;  %755 = vrot.lane.b32.xlu1 %v735_v20, %s1215_s22  ;;  %v1160_v24 = vpack.i.bf16 %v739_v21, %v726_v19 }
 0x2ed   : > { %779 = vrot.lane.b32.xlu0 %v735_v20, %s1218_s27  ;;  %813 = vrot.lane.b32.xlu1 %v735_v20, %s1217_s26 }
 0x2f1   : > { %823 = vrot.lane.b32.xlu1 %v735_v20, %s1219_s28  ;;  %1161 = vrot.lane.b32.xlu0 %v1160_v24, %s1213_s20 }
 0x2f5   : > { %1171 = vrot.lane.b32.xlu1 %v1160_v24, %s1215_s22  ;;  %1166 = vrot.lane.b32.xlu0 %v1160_v24, %s1214_s21 }
 0x2f9   : > { %1181 = vrot.lane.b32.xlu1 %v1160_v24, %s1217_s26  ;;  %1176 = vrot.lane.b32.xlu0 %v1160_v24, %s1216_s23 }
 0x2fd   : > { %1191 = vrot.lane.b32.xlu1 %v1160_v24, %s1219_s28  ;;  %1186 = vrot.lane.b32.xlu0 %v1160_v24, %s1218_s27 }
 0x301   : > { %795 = vrot.lane.b32.xlu1 %v739_v21, %s1220_s29  ;;  %1196 = vrot.lane.b32.xlu0 %v1195_v25, %s1220_s29 }
 0x305   : > { %846 = vperm.xlu0 %1159, %v843_v27  }
 0x357   : > { %v744_v28 = vpop.permute.xlu0 %743  ;;  %v804_v29 = vpop.permute.xlu1 %803 }
 0x35b   : > { %v768_v30 = vpop.permute.xlu0 %767  ;;  %v756_v31 = vpop.permute.xlu1 %755 }
 0x35f   : > { %v780_v32 = vpop.permute.xlu0 %779  ;;  %v814_v33 = vpop.permute.xlu1 %813 }
 0x363   : > { %v1162_v34 = vpop.permute.xlu0 %1161  ;;  %v824_v35 = vpop.permute.xlu1 %823 }
 0x364   : > { %v1164_v36 = vunpack.i.h.bf16 %v1162_v34  ;;  %v1163_v37 = vunpack.i.l.bf16 %v1162_v34 }
 0x366   : > { %v809_v38 = vsel %vm620_vm7, %v804_v29, %v1163_v37  ;;  %v810_v39 = vsel %vm620_vm7, %v1163_v37, %v1164_v36  ;;  %vm1628_vm7 = vcmask 900096  }
 0x367   : > { %v1012_v40 = vpack.c.bf16 %v810_v39, %v726_v19  ;;  %v1015_v41 = vpack.c.bf16 %v809_v38, %v735_v20  ;;  %v1167_v42 = vpop.permute.xlu0 %1166  ;;  %v1172_v43 = vpop.permute.xlu1 %1171 }
 0x368   : > { %v1169_v44 = vunpack.i.h.bf16 %v1167_v42  ;;  %v1168_v45 = vunpack.i.l.bf16 %v1167_v42  ;;  %v1174_v46 = vunpack.i.h.bf16 %v1172_v43  ;;  %v1173_v48 = vunpack.i.l.bf16 %v1172_v43 }
 0x369   : > { %1013 = vmatprep.subr.msk.bf16.mxu1 %vm1421_vm12, %v1012_v40 }
 0x36a   : > { %v749_v49 = vsel %vm1624_vm4, %v744_v28, %v1168_v45  ;;  %v750_v50 = vsel %vm1625_vm11, %v1168_v45, %v1169_v44  ;;  %v761_v52 = vsel %vm1626_vm6, %v756_v31, %v1173_v48  ;;  %v762_v53 = vsel %vm1627_vm1, %v1173_v48, %v1174_v46  ;;  %1016 = vmatpush1.bf16.msk.msra.mxu1 %vm1430_vm14, %v1015_v41  ;;  %vm1629_vm1 = vmmov %vm1628_vm7  ;;  %v734_v28 = vld [vmem:[%s1596_s5] sm:$0x3] }
 0x36b   : > { %v1018_v54 = vpack.c.bf16 %v762_v53, %v750_v50  ;;  %v1021_v55 = vpack.c.bf16 %v761_v52, %v749_v49  ;;  %v1177_v56 = vpop.permute.xlu0 %1176  ;;  %v1182_v57 = vpop.permute.xlu1 %1181  ;;  %vm1630_vm6 = vcmask 908288  }
 0x36c   : > { %v1179_v58 = vunpack.i.h.bf16 %v1177_v56  ;;  %v1178_v59 = vunpack.i.l.bf16 %v1177_v56  ;;  %v1184_v60 = vunpack.i.h.bf16 %v1182_v57  ;;  %v1183_v61 = vunpack.i.l.bf16 %v1182_v57  ;;  %vm1631_vm4 = vmmov %vm1630_vm6 }
 0x36d   : > { %1019 = vmatprep.subr.msk.bf16.mxu1 %vm991_vm2, %v1018_v54  ;;  %vm1633_vm2 = vmmov %vm1632_vm8 }
 0x36e   : > { %v773_v62 = vsel %vm1628_vm7, %v768_v30, %v1178_v59  ;;  %v774_v63 = vsel %vm1629_vm1, %v1178_v59, %v1179_v58  ;;  %v819_v0 = vsel %vm1630_vm6, %v814_v33, %v1183_v61  ;;  %v820_v1 = vsel %vm1631_vm4, %v1183_v61, %v1184_v60  ;;  %1022 = vmatpush1.bf16.msk.msra.mxu1 %vm994_vm5, %v1021_v55 }
 0x36f   : > { %v1024_v2 = vpack.c.bf16 %v774_v63, %v820_v1  ;;  %v1027_v9 = vpack.c.bf16 %v773_v62, %v819_v0  ;;  %v1187_v3 = vpop.permute.xlu0 %1186  ;;  %v1192_v4 = vpop.permute.xlu1 %1191 }
 0x370   : > { %v1189_v5 = vunpack.i.h.bf16 %v1187_v3  ;;  %v1188_v6 = vunpack.i.l.bf16 %v1187_v3  ;;  %v1194_v7 = vunpack.i.h.bf16 %v1192_v4  ;;  %v1193_v8 = vunpack.i.l.bf16 %v1192_v4 }
 0x371   : > { %1025 = vmatprep.subr.msk.bf16.mxu1 %vm1475_vm10, %v1024_v2  ;;  %vm1635_vm10 = vmmov %vm1634_vm9 }
 0x372   : > { %v785_v10 = vsel %vm594_vm13, %v780_v32, %v1188_v6  ;;  %v786_v11 = vsel %vm594_vm13, %v1188_v6, %v1189_v5  ;;  %v829_v12 = vsel %vm1632_vm8, %v824_v35, %v1193_v8  ;;  %v830_v13 = vsel %vm1633_vm2, %v1193_v8, %v1194_v7  ;;  %1028 = vmatpush1.bf16.msk.msra.mxu1 %vm1482_vm3, %v1027_v9 }
 0x373   : > { %v1030_v14 = vpack.c.bf16 %v830_v13, %v786_v11  ;;  %v1033_v15 = vpack.c.bf16 %v829_v12, %v785_v10  ;;  %v1197_v16 = vpop.permute.xlu0 %1196  ;;  %v796_v20 = vpop.permute.xlu1 %795  ;;  %vm1636_vm13 = vcmask 1043456  }
 0x374   : > { %v1199_v18 = vunpack.i.h.bf16 %v1197_v16  ;;  %v1198_v19 = vunpack.i.l.bf16 %v1197_v16  ;;  %vm1637_vm3 = vmmov %vm1636_vm13 }
 0x375   : > { %1031 = vmatprep.subr.msk.bf16.mxu1 %vm1421_vm12, %v1030_v14  ;;  %vm1638_vm12 = vcmask 588800  }
 0x376   : > { %v797_v47 = vsel %vm1634_vm9, %v1198_v19, %v1199_v18  ;;  %v798_v21 = vsel %vm1635_vm10, %v1199_v18, %v796_v20  ;;  %1034 = vmatpush1.bf16.msk.msra.mxu1 %vm1430_vm14, %v1033_v15 }
 0x377   : > { %v802_v51 = vsel %vm1434_vm15, %v798_v21, 0.0  ;;  %v801_v24 = vsel %vm1438_vm0, %v797_v47, 0.0 }
 0x378   : > { %v842_v25 = vpack.c.bf16 %v802_v51, %v802_v51  ;;  %v841_v27 = vpack.c.bf16 %v801_v24, %v801_v24 }
 0x37a   : > { %1035 = vmatprep.subr.msk.bf16.mxu1 %vm1636_vm13, %v842_v25  ;;  %v853_v17 = vsel %vm1637_vm3, %v841_v27, 0 }
 0x37b   : > { %867 = vmatpush1.bf16.msra.mxu1 %v853_v17 }
 0x37e   : > { %1036 = vmatmul.mubr.msk.bf16.vlgmr.msra.gmra.mrb[4].mxu1 %vm1638_vm12, %v734_v28 }
 0x384   : > { %v847_v22 = vpop.permute.xlu0 %846 }
 0x451   : > { %v892_v23 = vpop.f32.mrb[4].mxu1 }
 0x452   : > { %v893_v29 = vadd.f32 %v892_v23, %v847_v22  ;;  %v894_v30 = vpop.f32.mrb[5].mxu1 }
 0x453   : > { %v895_v26 = vadd.f32 %v894_v30, %v847_v22  ;;  %v896_v31 = vpop.f32.mrb[6].mxu1 }
 0x454   : > { %v899_v32 = vmax.f32 %v893_v29, 0.0  ;;  %v897_v33 = vpop.f32.mrb[7].mxu1 }
 0x455   : > { %v900_v34 = vmax.f32 %v895_v26, 0.0 }
 0x457   : > { %v903_v35 = vcombine.low %v899_v32, %v900_v34 }
 0x459   : > { %905 = vst [vmem:[%s295_s18] sm:$0xff] %v903_v35 }
 0x45a PF: > { %s17_s24 = sadd.s32 1, %s1207_s24  }
 0x45b   : > { %p14_p4 = scmp.ge.s32.totalorder %s17_s24, 4  }
 0x45d   :  { %16 = sbr.rel (!%p14_p4) target bundleno = 1 (0x1), region = 81 }

</bundles_post_ra>
